<compile_context>
chip_gen: v6e
topology: v6e:2x2x1
jax: 0.10.0
libtpu: 0.0.40
codegen_flags: <defaults>
</compile_context>

<pallas_src>
import jax
import jax.numpy as jnp
from jax import lax
from jax.experimental import pallas as pl
from jax.experimental.pallas import tpu as pltpu


def _decoder_kernel(x_ref, h0_ref, c0_ref, wih_ref, whh_ref, b_ref,
                    wlin_ref, blin_ref,
                    dec_ref, y_ref, hn_ref, cn_ref,
                    hist_scr):
    T = dec_ref.shape[0]
    B, H = h0_ref.shape
    H3 = 3 * H

    # ---- Phase 1: batched input projection (no sequential dependence) ----
    # (T*B, I) @ (I, 4H) + (1, 4H)  -> one MXU call for the whole sequence.
    xg = (jnp.dot(x_ref[...], wih_ref[...], preferred_element_type=jnp.float32)
          + b_ref[...])

    whh = whh_ref[...]                       # (H, 4H), hoisted out of the loop
    h = h0_ref[...].astype(jnp.float32)      # (B, H)
    c = c0_ref[...].astype(jnp.float32)      # (B, H)

    # ---- Phase 2: serial recurrence (statically unrolled, T is small) ----
    # Gate columns are pre-ordered host-side as [i, f, o, g].
    for t in range(T):
        gates = xg[t * B:(t + 1) * B, :] + jnp.dot(
            h, whh, preferred_element_type=jnp.float32)      # (B, 4H)
        sfo = jax.nn.sigmoid(gates[:, :H3])                   # i | f | o
        g = jnp.tanh(gates[:, H3:])                           # g
        c = sfo[:, H:2 * H] * c + sfo[:, :H] * g
        h = sfo[:, 2 * H:H3] * jnp.tanh(c)

        hist_scr[pl.ds(t * B, B), :] = h                      # keep history for phase 3
        dec_ref[t] = h.astype(dec_ref.dtype)

    hn_ref[...] = h.astype(hn_ref.dtype)
    cn_ref[...] = c.astype(cn_ref.dtype)

    # ---- Phase 3: output Linear hoisted out of the recurrence ----
    # One (T*B, H) @ (H, O) matmul instead of T tiny per-step matmuls.
    y = (jnp.dot(hist_scr[...], wlin_ref[...], preferred_element_type=jnp.float32)
         + blin_ref[...])
    y_ref[...] = y.astype(y_ref.dtype)


@jax.jit
def decoder_forward(x, hidden, params):
    """x: (T, B, I); hidden: (h0, c0) each (1, B, H).

    Returns (projected_and_squeezed, decoder_output, (h_n, c_n)),
    mirroring the PyTorch Decoder.forward semantics.
    """
    h0, c0 = hidden
    T, B, I = x.shape
    H = h0.shape[-1]
    O = params["w_lin"].shape[0]

    # Reorder LSTM gate blocks from PyTorch order [i, f, g, o] to [i, f, o, g]
    # so the kernel applies one sigmoid over a contiguous 3H range and one tanh.
    def reorder(w):
        return jnp.concatenate(
            [w[0:H], w[H:2 * H], w[3 * H:4 * H], w[2 * H:3 * H]], axis=0)

    wih_r = reorder(params["w_ih"]).T                      # (I, 4H)
    whh_r = reorder(params["w_hh"]).T                      # (H, 4H)
    b_r = reorder(params["b_ih"] + params["b_hh"])[None]   # (1, 4H)
    wlin_t = params["w_lin"].T                             # (H, O)
    blin = params["b_lin"][None, :]                        # (1, O)

    x2d = x.reshape(T * B, I)                              # rows ordered (t, b)

    grid_spec = pltpu.PrefetchScalarGridSpec(
        num_scalar_prefetch=0,
        grid=(1,),
        in_specs=[
            pl.BlockSpec((T * B, I), lambda i: (0, 0)),    # x (flattened over time)
            pl.BlockSpec((B, H), lambda i: (0, 0)),        # h0
            pl.BlockSpec((B, H), lambda i: (0, 0)),        # c0
            pl.BlockSpec((I, 4 * H), lambda i: (0, 0)),    # W_ih^T (reordered)
            pl.BlockSpec((H, 4 * H), lambda i: (0, 0)),    # W_hh^T (reordered)
            pl.BlockSpec((1, 4 * H), lambda i: (0, 0)),    # b_ih + b_hh (reordered)
            pl.BlockSpec((H, O), lambda i: (0, 0)),        # W_lin^T
            pl.BlockSpec((1, O), lambda i: (0, 0)),        # b_lin
        ],
        out_specs=[
            pl.BlockSpec((T, B, H), lambda i: (0, 0, 0)),  # decoder_output
            pl.BlockSpec((T * B, O), lambda i: (0, 0)),    # projected (flat)
            pl.BlockSpec((B, H), lambda i: (0, 0)),        # h_n
            pl.BlockSpec((B, H), lambda i: (0, 0)),        # c_n
        ],
        scratch_shapes=[
            pltpu.VMEM((T * B, H), jnp.float32),           # h history for phase 3
        ],
    )

    dec_out, y2d, h_n, c_n = pl.pallas_call(
        _decoder_kernel,
        out_shape=(
            jax.ShapeDtypeStruct((T, B, H), x.dtype),
            jax.ShapeDtypeStruct((T * B, O), x.dtype),
            jax.ShapeDtypeStruct((B, H), x.dtype),
            jax.ShapeDtypeStruct((B, H), x.dtype),
        ),
        grid_spec=grid_spec,
        compiler_params=pltpu.CompilerParams(
            dimension_semantics=("arbitrary",)),
    )(x2d, h0[0], c0[0], wih_r, whh_r, b_r, wlin_t, blin)

    y = y2d.reshape(T, B, O)
    # torch.stack(outputs, dim=1).squeeze()  (squeeze of ALL size-1 dims, as in torch)
    return jnp.squeeze(y), dec_out, (h_n[None], c_n[None])


def _reference_forward(x, hidden, params):
    """Pure-JAX reference matching PyTorch LSTM + Linear semantics."""
    h0, c0 = hidden
    H = h0.shape[-1]
    wih_t = params["w_ih"].T
    whh_t = params["w_hh"].T
    b = params["b_ih"] + params["b_hh"]

    def step(carry, x_t):
        h, c = carry
        gates = x_t @ wih_t + h @ whh_t + b
        i = jax.nn.sigmoid(gates[:, 0:H])
        f = jax.nn.sigmoid(gates[:, H:2 * H])
        g = jnp.tanh(gates[:, 2 * H:3 * H])
        o = jax.nn.sigmoid(gates[:, 3 * H:4 * H])
        c_new = f * c + i * g
        h_new = o * jnp.tanh(c_new)
        return (h_new, c_new), h_new

    (h_n, c_n), dec_out = lax.scan(step, (h0[0], c0[0]), x)
    y = dec_out @ params["w_lin"].T + params["b_lin"]
    return jnp.squeeze(y), dec_out, (h_n[None], c_n[None])


if __name__ == "__main__":
    # Small shapes consistent with the module.
    T, B = 8, 4            # seq_len, batch
    INPUT, HIDDEN, OUTPUT = 16, 32, 8

    key = jax.random.PRNGKey(0)
    ks = jax.random.split(key, 9)
    scale = 1.0 / jnp.sqrt(HIDDEN)

    params = {
        "w_ih": jax.random.uniform(ks[0], (4 * HIDDEN, INPUT), jnp.float32, -scale, scale),
        "w_hh": jax.random.uniform(ks[1], (4 * HIDDEN, HIDDEN), jnp.float32, -scale, scale),
        "b_ih": jax.random.uniform(ks[2], (4 * HIDDEN,), jnp.float32, -scale, scale),
        "b_hh": jax.random.uniform(ks[3], (4 * HIDDEN,), jnp.float32, -scale, scale),
        "w_lin": jax.random.uniform(ks[4], (OUTPUT, HIDDEN), jnp.float32, -scale, scale),
        "b_lin": jax.random.uniform(ks[5], (OUTPUT,), jnp.float32, -scale, scale),
    }

    x = jax.random.normal(ks[6], (T, B, INPUT), jnp.float32)
    h0 = jax.random.normal(ks[7], (1, B, HIDDEN), jnp.float32)
    c0 = jax.random.normal(ks[8], (1, B, HIDDEN), jnp.float32)

    y, dec_out, (h_n, c_n) = decoder_forward(x, (h0, c0), params)
    jax.block_until_ready((y, dec_out, h_n, c_n))

    # Correctness check against a pure-JAX LSTM reference.
    y_r, dec_r, (h_r, c_r) = _reference_forward(x, (h0, c0), params)
    assert jnp.allclose(y, y_r, atol=1e-5, rtol=1e-5)
    assert jnp.allclose(dec_out, dec_r, atol=1e-5, rtol=1e-5)
    assert jnp.allclose(h_n, h_r, atol=1e-5, rtol=1e-5)
    assert jnp.allclose(c_n, c_r, atol=1e-5, rtol=1e-5)

    print("KERNEL_OK")
</pallas_src>

<mosaic_0001>
module attributes {stable_mosaic.version = 11 : i64} {
  func.func @_decoder_kernel(%arg0: i32, %arg1: memref<32x16xf32, #tpu.memory_space<vmem>>, %arg2: memref<4x32xf32, #tpu.memory_space<vmem>>, %arg3: memref<4x32xf32, #tpu.memory_space<vmem>>, %arg4: memref<16x128xf32, #tpu.memory_space<vmem>>, %arg5: memref<32x128xf32, #tpu.memory_space<vmem>>, %arg6: memref<1x128xf32, #tpu.memory_space<vmem>>, %arg7: memref<32x8xf32, #tpu.memory_space<vmem>>, %arg8: memref<1x8xf32, #tpu.memory_space<vmem>>, %arg9: memref<8x4x32xf32, #tpu.memory_space<vmem>>, %arg10: memref<32x8xf32, #tpu.memory_space<vmem>>, %arg11: memref<4x32xf32, #tpu.memory_space<vmem>>, %arg12: memref<4x32xf32, #tpu.memory_space<vmem>>, %arg13: memref<32x32xf32, #tpu.memory_space<vmem>>) attributes {dimension_semantics = [#tpu.dimension_semantics<arbitrary>], iteration_bounds = array<i64: 1>, scalar_prefetch = 0 : i64, scratch_operands = 1 : i64, tpu.core_type = #tpu.core_type<tc>, window_params = [{pipeline_mode = #tpu.pipeline_mode<synchronous>, transform_indices = @transform_0, window_bounds = array<i64: 32, 16>}, {pipeline_mode = #tpu.pipeline_mode<synchronous>, transform_indices = @transform_1, window_bounds = array<i64: 4, 32>}, {pipeline_mode = #tpu.pipeline_mode<synchronous>, transform_indices = @transform_2, window_bounds = array<i64: 4, 32>}, {pipeline_mode = #tpu.pipeline_mode<synchronous>, transform_indices = @transform_3, window_bounds = array<i64: 16, 128>}, {pipeline_mode = #tpu.pipeline_mode<synchronous>, transform_indices = @transform_4, window_bounds = array<i64: 32, 128>}, {pipeline_mode = #tpu.pipeline_mode<synchronous>, transform_indices = @transform_5, window_bounds = array<i64: 1, 128>}, {pipeline_mode = #tpu.pipeline_mode<synchronous>, transform_indices = @transform_6, window_bounds = array<i64: 32, 8>}, {pipeline_mode = #tpu.pipeline_mode<synchronous>, transform_indices = @transform_7, window_bounds = array<i64: 1, 8>}, {pipeline_mode = #tpu.pipeline_mode<synchronous>, transform_indices = @transform_8, window_bounds = array<i64: 8, 4, 32>}, {pipeline_mode = #tpu.pipeline_mode<synchronous>, transform_indices = @transform_9, window_bounds = array<i64: 32, 8>}, {pipeline_mode = #tpu.pipeline_mode<synchronous>, transform_indices = @transform_10, window_bounds = array<i64: 4, 32>}, {pipeline_mode = #tpu.pipeline_mode<synchronous>, transform_indices = @transform_11, window_bounds = array<i64: 4, 32>}]} {
    %c0 = arith.constant 0 : index
    %c0_0 = arith.constant 0 : index
    %0 = vector.load %arg1[%c0, %c0_0] : memref<32x16xf32, #tpu.memory_space<vmem>>, vector<32x16xf32>
    %c0_1 = arith.constant 0 : index
    %c0_2 = arith.constant 0 : index
    %1 = vector.load %arg4[%c0_1, %c0_2] : memref<16x128xf32, #tpu.memory_space<vmem>>, vector<16x128xf32>
    %cst = arith.constant dense<0.000000e+00> : vector<32x128xf32>
    %2 = tpu.matmul %0, %1, %cst {dimension_numbers = #tpu.dot_dimension_numbers<[1], [0], [0], [1], [0, 0, 1, 1], [], []>} : vector<32x16xf32>, vector<16x128xf32>, vector<32x128xf32> -> vector<32x128xf32>
    %c0_3 = arith.constant 0 : index
    %c0_4 = arith.constant 0 : index
    %3 = vector.load %arg6[%c0_3, %c0_4] : memref<1x128xf32, #tpu.memory_space<vmem>>, vector<1x128xf32>
    %4 = vector.broadcast %3 : vector<1x128xf32> to vector<32x128xf32>
    %5 = arith.addf %2, %4 : vector<32x128xf32>
    %c0_5 = arith.constant 0 : index
    %c0_6 = arith.constant 0 : index
    %6 = vector.load %arg5[%c0_5, %c0_6] : memref<32x128xf32, #tpu.memory_space<vmem>>, vector<32x128xf32>
    %c0_7 = arith.constant 0 : index
    %c0_8 = arith.constant 0 : index
    %7 = vector.load %arg2[%c0_7, %c0_8] : memref<4x32xf32, #tpu.memory_space<vmem>>, vector<4x32xf32>
    %c0_9 = arith.constant 0 : index
    %c0_10 = arith.constant 0 : index
    %8 = vector.load %arg3[%c0_9, %c0_10] : memref<4x32xf32, #tpu.memory_space<vmem>>, vector<4x32xf32>
    %9 = vector.extract_strided_slice %5 {offsets = [0, 0], sizes = [4, 128], strides = [1, 1]} : vector<32x128xf32> to vector<4x128xf32>
    %cst_11 = arith.constant dense<0.000000e+00> : vector<4x128xf32>
    %10 = tpu.matmul %7, %6, %cst_11 {dimension_numbers = #tpu.dot_dimension_numbers<[1], [0], [0], [1], [0, 0, 1, 1], [], []>} : vector<4x32xf32>, vector<32x128xf32>, vector<4x128xf32> -> vector<4x128xf32>
    %11 = arith.addf %9, %10 : vector<4x128xf32>
    %12 = vector.extract_strided_slice %11 {offsets = [0, 0], sizes = [4, 96], strides = [1, 1]} : vector<4x128xf32> to vector<4x96xf32>
    %13 = arith.negf %12 : vector<4x96xf32>
    %14 = math.exp %13 : vector<4x96xf32>
    %cst_12 = arith.constant 1.000000e+00 : f32
    %15 = vector.broadcast %cst_12 : f32 to vector<4x96xf32>
    %16 = arith.addf %15, %14 : vector<4x96xf32>
    %17 = arith.divf %15, %16 : vector<4x96xf32>
    %18 = vector.extract_strided_slice %11 {offsets = [0, 96], sizes = [4, 32], strides = [1, 1]} : vector<4x128xf32> to vector<4x32xf32>
    %19 = math.tanh %18 : vector<4x32xf32>
    %20 = vector.extract_strided_slice %17 {offsets = [0, 32], sizes = [4, 32], strides = [1, 1]} : vector<4x96xf32> to vector<4x32xf32>
    %21 = arith.mulf %20, %8 : vector<4x32xf32>
    %22 = vector.extract_strided_slice %17 {offsets = [0, 0], sizes = [4, 32], strides = [1, 1]} : vector<4x96xf32> to vector<4x32xf32>
    %23 = arith.mulf %22, %19 : vector<4x32xf32>
    %24 = arith.addf %21, %23 : vector<4x32xf32>
    %25 = vector.extract_strided_slice %17 {offsets = [0, 64], sizes = [4, 32], strides = [1, 1]} : vector<4x96xf32> to vector<4x32xf32>
    %26 = math.tanh %24 : vector<4x32xf32>
    %27 = arith.mulf %25, %26 : vector<4x32xf32>
    %c0_13 = arith.constant 0 : index
    %c0_14 = arith.constant 0 : index
    %28 = vector.load %arg13[%c0_13, %c0_14] : memref<32x32xf32, #tpu.memory_space<vmem>>, vector<4x32xf32>
    tpu.vector_store %arg13[%c0_13, %c0_14], %27 {strides = array<i32>} : memref<32x32xf32, #tpu.memory_space<vmem>>, vector<4x32xf32>,
    %c0_15 = arith.constant 0 : index
    %c0_16 = arith.constant 0 : index
    %c0_17 = arith.constant 0 : index
    %29 = vector.load %arg9[%c0_15, %c0_16, %c0_17] : memref<8x4x32xf32, #tpu.memory_space<vmem>>, vector<1x4x32xf32>
    %30 = vector.shape_cast %29 : vector<1x4x32xf32> to vector<4x32xf32>
    %31 = vector.shape_cast %27 : vector<4x32xf32> to vector<1x4x32xf32>
    tpu.vector_store %arg9[%c0_15, %c0_16, %c0_17], %31 {strides = array<i32>} : memref<8x4x32xf32, #tpu.memory_space<vmem>>, vector<1x4x32xf32>,
    %32 = vector.extract_strided_slice %5 {offsets = [4, 0], sizes = [4, 128], strides = [1, 1]} : vector<32x128xf32> to vector<4x128xf32>
    %cst_18 = arith.constant dense<0.000000e+00> : vector<4x128xf32>
    %33 = tpu.matmul %27, %6, %cst_18 {dimension_numbers = #tpu.dot_dimension_numbers<[1], [0], [0], [1], [0, 0, 1, 1], [], []>} : vector<4x32xf32>, vector<32x128xf32>, vector<4x128xf32> -> vector<4x128xf32>
    %34 = arith.addf %32, %33 : vector<4x128xf32>
    %35 = vector.extract_strided_slice %34 {offsets = [0, 0], sizes = [4, 96], strides = [1, 1]} : vector<4x128xf32> to vector<4x96xf32>
    %36 = arith.negf %35 : vector<4x96xf32>
    %37 = math.exp %36 : vector<4x96xf32>
    %cst_19 = arith.constant 1.000000e+00 : f32
    %38 = vector.broadcast %cst_19 : f32 to vector<4x96xf32>
    %39 = arith.addf %38, %37 : vector<4x96xf32>
    %40 = arith.divf %38, %39 : vector<4x96xf32>
    %41 = vector.extract_strided_slice %34 {offsets = [0, 96], sizes = [4, 32], strides = [1, 1]} : vector<4x128xf32> to vector<4x32xf32>
    %42 = math.tanh %41 : vector<4x32xf32>
    %43 = vector.extract_strided_slice %40 {offsets = [0, 32], sizes = [4, 32], strides = [1, 1]} : vector<4x96xf32> to vector<4x32xf32>
    %44 = arith.mulf %43, %24 : vector<4x32xf32>
    %45 = vector.extract_strided_slice %40 {offsets = [0, 0], sizes = [4, 32], strides = [1, 1]} : vector<4x96xf32> to vector<4x32xf32>
    %46 = arith.mulf %45, %42 : vector<4x32xf32>
    %47 = arith.addf %44, %46 : vector<4x32xf32>
    %48 = vector.extract_strided_slice %40 {offsets = [0, 64], sizes = [4, 32], strides = [1, 1]} : vector<4x96xf32> to vector<4x32xf32>
    %49 = math.tanh %47 : vector<4x32xf32>
    %50 = arith.mulf %48, %49 : vector<4x32xf32>
    %c4 = arith.constant 4 : index
    %c0_20 = arith.constant 0 : index
    %51 = vector.load %arg13[%c4, %c0_20] : memref<32x32xf32, #tpu.memory_space<vmem>>, vector<4x32xf32>
    tpu.vector_store %arg13[%c4, %c0_20], %50 {strides = array<i32>} : memref<32x32xf32, #tpu.memory_space<vmem>>, vector<4x32xf32>,
    %c1 = arith.constant 1 : index
    %c0_21 = arith.constant 0 : index
    %c0_22 = arith.constant 0 : index
    %52 = vector.load %arg9[%c1, %c0_21, %c0_22] : memref<8x4x32xf32, #tpu.memory_space<vmem>>, vector<1x4x32xf32>
    %53 = vector.shape_cast %52 : vector<1x4x32xf32> to vector<4x32xf32>
    %54 = vector.shape_cast %50 : vector<4x32xf32> to vector<1x4x32xf32>
    tpu.vector_store %arg9[%c1, %c0_21, %c0_22], %54 {strides = array<i32>} : memref<8x4x32xf32, #tpu.memory_space<vmem>>, vector<1x4x32xf32>,
    %55 = vector.extract_strided_slice %5 {offsets = [8, 0], sizes = [4, 128], strides = [1, 1]} : vector<32x128xf32> to vector<4x128xf32>
    %cst_23 = arith.constant dense<0.000000e+00> : vector<4x128xf32>
    %56 = tpu.matmul %50, %6, %cst_23 {dimension_numbers = #tpu.dot_dimension_numbers<[1], [0], [0], [1], [0, 0, 1, 1], [], []>} : vector<4x32xf32>, vector<32x128xf32>, vector<4x128xf32> -> vector<4x128xf32>
    %57 = arith.addf %55, %56 : vector<4x128xf32>
    %58 = vector.extract_strided_slice %57 {offsets = [0, 0], sizes = [4, 96], strides = [1, 1]} : vector<4x128xf32> to vector<4x96xf32>
    %59 = arith.negf %58 : vector<4x96xf32>
    %60 = math.exp %59 : vector<4x96xf32>
    %cst_24 = arith.constant 1.000000e+00 : f32
    %61 = vector.broadcast %cst_24 : f32 to vector<4x96xf32>
    %62 = arith.addf %61, %60 : vector<4x96xf32>
    %63 = arith.divf %61, %62 : vector<4x96xf32>
    %64 = vector.extract_strided_slice %57 {offsets = [0, 96], sizes = [4, 32], strides = [1, 1]} : vector<4x128xf32> to vector<4x32xf32>
    %65 = math.tanh %64 : vector<4x32xf32>
    %66 = vector.extract_strided_slice %63 {offsets = [0, 32], sizes = [4, 32], strides = [1, 1]} : vector<4x96xf32> to vector<4x32xf32>
    %67 = arith.mulf %66, %47 : vector<4x32xf32>
    %68 = vector.extract_strided_slice %63 {offsets = [0, 0], sizes = [4, 32], strides = [1, 1]} : vector<4x96xf32> to vector<4x32xf32>
    %69 = arith.mulf %68, %65 : vector<4x32xf32>
    %70 = arith.addf %67, %69 : vector<4x32xf32>
    %71 = vector.extract_strided_slice %63 {offsets = [0, 64], sizes = [4, 32], strides = [1, 1]} : vector<4x96xf32> to vector<4x32xf32>
    %72 = math.tanh %70 : vector<4x32xf32>
    %73 = arith.mulf %71, %72 : vector<4x32xf32>
    %c8 = arith.constant 8 : index
    %c0_25 = arith.constant 0 : index
    %74 = vector.load %arg13[%c8, %c0_25] : memref<32x32xf32, #tpu.memory_space<vmem>>, vector<4x32xf32>
    tpu.vector_store %arg13[%c8, %c0_25], %73 {strides = array<i32>} : memref<32x32xf32, #tpu.memory_space<vmem>>, vector<4x32xf32>,
    %c2 = arith.constant 2 : index
    %c0_26 = arith.constant 0 : index
    %c0_27 = arith.constant 0 : index
    %75 = vector.load %arg9[%c2, %c0_26, %c0_27] : memref<8x4x32xf32, #tpu.memory_space<vmem>>, vector<1x4x32xf32>
    %76 = vector.shape_cast %75 : vector<1x4x32xf32> to vector<4x32xf32>
    %77 = vector.shape_cast %73 : vector<4x32xf32> to vector<1x4x32xf32>
    tpu.vector_store %arg9[%c2, %c0_26, %c0_27], %77 {strides = array<i32>} : memref<8x4x32xf32, #tpu.memory_space<vmem>>, vector<1x4x32xf32>,
    %78 = vector.extract_strided_slice %5 {offsets = [12, 0], sizes = [4, 128], strides = [1, 1]} : vector<32x128xf32> to vector<4x128xf32>
    %cst_28 = arith.constant dense<0.000000e+00> : vector<4x128xf32>
    %79 = tpu.matmul %73, %6, %cst_28 {dimension_numbers = #tpu.dot_dimension_numbers<[1], [0], [0], [1], [0, 0, 1, 1], [], []>} : vector<4x32xf32>, vector<32x128xf32>, vector<4x128xf32> -> vector<4x128xf32>
    %80 = arith.addf %78, %79 : vector<4x128xf32>
    %81 = vector.extract_strided_slice %80 {offsets = [0, 0], sizes = [4, 96], strides = [1, 1]} : vector<4x128xf32> to vector<4x96xf32>
    %82 = arith.negf %81 : vector<4x96xf32>
    %83 = math.exp %82 : vector<4x96xf32>
    %cst_29 = arith.constant 1.000000e+00 : f32
    %84 = vector.broadcast %cst_29 : f32 to vector<4x96xf32>
    %85 = arith.addf %84, %83 : vector<4x96xf32>
    %86 = arith.divf %84, %85 : vector<4x96xf32>
    %87 = vector.extract_strided_slice %80 {offsets = [0, 96], sizes = [4, 32], strides = [1, 1]} : vector<4x128xf32> to vector<4x32xf32>
    %88 = math.tanh %87 : vector<4x32xf32>
    %89 = vector.extract_strided_slice %86 {offsets = [0, 32], sizes = [4, 32], strides = [1, 1]} : vector<4x96xf32> to vector<4x32xf32>
    %90 = arith.mulf %89, %70 : vector<4x32xf32>
    %91 = vector.extract_strided_slice %86 {offsets = [0, 0], sizes = [4, 32], strides = [1, 1]} : vector<4x96xf32> to vector<4x32xf32>
    %92 = arith.mulf %91, %88 : vector<4x32xf32>
    %93 = arith.addf %90, %92 : vector<4x32xf32>
    %94 = vector.extract_strided_slice %86 {offsets = [0, 64], sizes = [4, 32], strides = [1, 1]} : vector<4x96xf32> to vector<4x32xf32>
    %95 = math.tanh %93 : vector<4x32xf32>
    %96 = arith.mulf %94, %95 : vector<4x32xf32>
    %c12 = arith.constant 12 : index
    %c0_30 = arith.constant 0 : index
    %97 = vector.load %arg13[%c12, %c0_30] : memref<32x32xf32, #tpu.memory_space<vmem>>, vector<4x32xf32>
    tpu.vector_store %arg13[%c12, %c0_30], %96 {strides = array<i32>} : memref<32x32xf32, #tpu.memory_space<vmem>>, vector<4x32xf32>,
    %c3 = arith.constant 3 : index
    %c0_31 = arith.constant 0 : index
    %c0_32 = arith.constant 0 : index
    %98 = vector.load %arg9[%c3, %c0_31, %c0_32] : memref<8x4x32xf32, #tpu.memory_space<vmem>>, vector<1x4x32xf32>
    %99 = vector.shape_cast %98 : vector<1x4x32xf32> to vector<4x32xf32>
    %100 = vector.shape_cast %96 : vector<4x32xf32> to vector<1x4x32xf32>
    tpu.vector_store %arg9[%c3, %c0_31, %c0_32], %100 {strides = array<i32>} : memref<8x4x32xf32, #tpu.memory_space<vmem>>, vector<1x4x32xf32>,
    %101 = vector.extract_strided_slice %5 {offsets = [16, 0], sizes = [4, 128], strides = [1, 1]} : vector<32x128xf32> to vector<4x128xf32>
    %cst_33 = arith.constant dense<0.000000e+00> : vector<4x128xf32>
    %102 = tpu.matmul %96, %6, %cst_33 {dimension_numbers = #tpu.dot_dimension_numbers<[1], [0], [0], [1], [0, 0, 1, 1], [], []>} : vector<4x32xf32>, vector<32x128xf32>, vector<4x128xf32> -> vector<4x128xf32>
    %103 = arith.addf %101, %102 : vector<4x128xf32>
    %104 = vector.extract_strided_slice %103 {offsets = [0, 0], sizes = [4, 96], strides = [1, 1]} : vector<4x128xf32> to vector<4x96xf32>
    %105 = arith.negf %104 : vector<4x96xf32>
    %106 = math.exp %105 : vector<4x96xf32>
    %cst_34 = arith.constant 1.000000e+00 : f32
    %107 = vector.broadcast %cst_34 : f32 to vector<4x96xf32>
    %108 = arith.addf %107, %106 : vector<4x96xf32>
    %109 = arith.divf %107, %108 : vector<4x96xf32>
    %110 = vector.extract_strided_slice %103 {offsets = [0, 96], sizes = [4, 32], strides = [1, 1]} : vector<4x128xf32> to vector<4x32xf32>
    %111 = math.tanh %110 : vector<4x32xf32>
    %112 = vector.extract_strided_slice %109 {offsets = [0, 32], sizes = [4, 32], strides = [1, 1]} : vector<4x96xf32> to vector<4x32xf32>
    %113 = arith.mulf %112, %93 : vector<4x32xf32>
    %114 = vector.extract_strided_slice %109 {offsets = [0, 0], sizes = [4, 32], strides = [1, 1]} : vector<4x96xf32> to vector<4x32xf32>
    %115 = arith.mulf %114, %111 : vector<4x32xf32>
    %116 = arith.addf %113, %115 : vector<4x32xf32>
    %117 = vector.extract_strided_slice %109 {offsets = [0, 64], sizes = [4, 32], strides = [1, 1]} : vector<4x96xf32> to vector<4x32xf32>
    %118 = math.tanh %116 : vector<4x32xf32>
    %119 = arith.mulf %117, %118 : vector<4x32xf32>
    %c16 = arith.constant 16 : index
    %c0_35 = arith.constant 0 : index
    %120 = vector.load %arg13[%c16, %c0_35] : memref<32x32xf32, #tpu.memory_space<vmem>>, vector<4x32xf32>
    tpu.vector_store %arg13[%c16, %c0_35], %119 {strides = array<i32>} : memref<32x32xf32, #tpu.memory_space<vmem>>, vector<4x32xf32>,
    %c4_36 = arith.constant 4 : index
    %c0_37 = arith.constant 0 : index
    %c0_38 = arith.constant 0 : index
    %121 = vector.load %arg9[%c4_36, %c0_37, %c0_38] : memref<8x4x32xf32, #tpu.memory_space<vmem>>, vector<1x4x32xf32>
    %122 = vector.shape_cast %121 : vector<1x4x32xf32> to vector<4x32xf32>
    %123 = vector.shape_cast %119 : vector<4x32xf32> to vector<1x4x32xf32>
    tpu.vector_store %arg9[%c4_36, %c0_37, %c0_38], %123 {strides = array<i32>} : memref<8x4x32xf32, #tpu.memory_space<vmem>>, vector<1x4x32xf32>,
    %124 = vector.extract_strided_slice %5 {offsets = [20, 0], sizes = [4, 128], strides = [1, 1]} : vector<32x128xf32> to vector<4x128xf32>
    %cst_39 = arith.constant dense<0.000000e+00> : vector<4x128xf32>
    %125 = tpu.matmul %119, %6, %cst_39 {dimension_numbers = #tpu.dot_dimension_numbers<[1], [0], [0], [1], [0, 0, 1, 1], [], []>} : vector<4x32xf32>, vector<32x128xf32>, vector<4x128xf32> -> vector<4x128xf32>
    %126 = arith.addf %124, %125 : vector<4x128xf32>
    %127 = vector.extract_strided_slice %126 {offsets = [0, 0], sizes = [4, 96], strides = [1, 1]} : vector<4x128xf32> to vector<4x96xf32>
    %128 = arith.negf %127 : vector<4x96xf32>
    %129 = math.exp %128 : vector<4x96xf32>
    %cst_40 = arith.constant 1.000000e+00 : f32
    %130 = vector.broadcast %cst_40 : f32 to vector<4x96xf32>
    %131 = arith.addf %130, %129 : vector<4x96xf32>
    %132 = arith.divf %130, %131 : vector<4x96xf32>
    %133 = vector.extract_strided_slice %126 {offsets = [0, 96], sizes = [4, 32], strides = [1, 1]} : vector<4x128xf32> to vector<4x32xf32>
    %134 = math.tanh %133 : vector<4x32xf32>
    %135 = vector.extract_strided_slice %132 {offsets = [0, 32], sizes = [4, 32], strides = [1, 1]} : vector<4x96xf32> to vector<4x32xf32>
    %136 = arith.mulf %135, %116 : vector<4x32xf32>
    %137 = vector.extract_strided_slice %132 {offsets = [0, 0], sizes = [4, 32], strides = [1, 1]} : vector<4x96xf32> to vector<4x32xf32>
    %138 = arith.mulf %137, %134 : vector<4x32xf32>
    %139 = arith.addf %136, %138 : vector<4x32xf32>
    %140 = vector.extract_strided_slice %132 {offsets = [0, 64], sizes = [4, 32], strides = [1, 1]} : vector<4x96xf32> to vector<4x32xf32>
    %141 = math.tanh %139 : vector<4x32xf32>
    %142 = arith.mulf %140, %141 : vector<4x32xf32>
    %c20 = arith.constant 20 : index
    %c0_41 = arith.constant 0 : index
    %143 = vector.load %arg13[%c20, %c0_41] : memref<32x32xf32, #tpu.memory_space<vmem>>, vector<4x32xf32>
    tpu.vector_store %arg13[%c20, %c0_41], %142 {strides = array<i32>} : memref<32x32xf32, #tpu.memory_space<vmem>>, vector<4x32xf32>,
    %c5 = arith.constant 5 : index
    %c0_42 = arith.constant 0 : index
    %c0_43 = arith.constant 0 : index
    %144 = vector.load %arg9[%c5, %c0_42, %c0_43] : memref<8x4x32xf32, #tpu.memory_space<vmem>>, vector<1x4x32xf32>
    %145 = vector.shape_cast %144 : vector<1x4x32xf32> to vector<4x32xf32>
    %146 = vector.shape_cast %142 : vector<4x32xf32> to vector<1x4x32xf32>
    tpu.vector_store %arg9[%c5, %c0_42, %c0_43], %146 {strides = array<i32>} : memref<8x4x32xf32, #tpu.memory_space<vmem>>, vector<1x4x32xf32>,
    %147 = vector.extract_strided_slice %5 {offsets = [24, 0], sizes = [4, 128], strides = [1, 1]} : vector<32x128xf32> to vector<4x128xf32>
    %cst_44 = arith.constant dense<0.000000e+00> : vector<4x128xf32>
    %148 = tpu.matmul %142, %6, %cst_44 {dimension_numbers = #tpu.dot_dimension_numbers<[1], [0], [0], [1], [0, 0, 1, 1], [], []>} : vector<4x32xf32>, vector<32x128xf32>, vector<4x128xf32> -> vector<4x128xf32>
    %149 = arith.addf %147, %148 : vector<4x128xf32>
    %150 = vector.extract_strided_slice %149 {offsets = [0, 0], sizes = [4, 96], strides = [1, 1]} : vector<4x128xf32> to vector<4x96xf32>
    %151 = arith.negf %150 : vector<4x96xf32>
    %152 = math.exp %151 : vector<4x96xf32>
    %cst_45 = arith.constant 1.000000e+00 : f32
    %153 = vector.broadcast %cst_45 : f32 to vector<4x96xf32>
    %154 = arith.addf %153, %152 : vector<4x96xf32>
    %155 = arith.divf %153, %154 : vector<4x96xf32>
    %156 = vector.extract_strided_slice %149 {offsets = [0, 96], sizes = [4, 32], strides = [1, 1]} : vector<4x128xf32> to vector<4x32xf32>
    %157 = math.tanh %156 : vector<4x32xf32>
    %158 = vector.extract_strided_slice %155 {offsets = [0, 32], sizes = [4, 32], strides = [1, 1]} : vector<4x96xf32> to vector<4x32xf32>
    %159 = arith.mulf %158, %139 : vector<4x32xf32>
    %160 = vector.extract_strided_slice %155 {offsets = [0, 0], sizes = [4, 32], strides = [1, 1]} : vector<4x96xf32> to vector<4x32xf32>
    %161 = arith.mulf %160, %157 : vector<4x32xf32>
    %162 = arith.addf %159, %161 : vector<4x32xf32>
    %163 = vector.extract_strided_slice %155 {offsets = [0, 64], sizes = [4, 32], strides = [1, 1]} : vector<4x96xf32> to vector<4x32xf32>
    %164 = math.tanh %162 : vector<4x32xf32>
    %165 = arith.mulf %163, %164 : vector<4x32xf32>
    %c24 = arith.constant 24 : index
    %c0_46 = arith.constant 0 : index
    %166 = vector.load %arg13[%c24, %c0_46] : memref<32x32xf32, #tpu.memory_space<vmem>>, vector<4x32xf32>
    tpu.vector_store %arg13[%c24, %c0_46], %165 {strides = array<i32>} : memref<32x32xf32, #tpu.memory_space<vmem>>, vector<4x32xf32>,
    %c6 = arith.constant 6 : index
    %c0_47 = arith.constant 0 : index
    %c0_48 = arith.constant 0 : index
    %167 = vector.load %arg9[%c6, %c0_47, %c0_48] : memref<8x4x32xf32, #tpu.memory_space<vmem>>, vector<1x4x32xf32>
    %168 = vector.shape_cast %167 : vector<1x4x32xf32> to vector<4x32xf32>
    %169 = vector.shape_cast %165 : vector<4x32xf32> to vector<1x4x32xf32>
    tpu.vector_store %arg9[%c6, %c0_47, %c0_48], %169 {strides = array<i32>} : memref<8x4x32xf32, #tpu.memory_space<vmem>>, vector<1x4x32xf32>,
    %170 = vector.extract_strided_slice %5 {offsets = [28, 0], sizes = [4, 128], strides = [1, 1]} : vector<32x128xf32> to vector<4x128xf32>
    %cst_49 = arith.constant dense<0.000000e+00> : vector<4x128xf32>
    %171 = tpu.matmul %165, %6, %cst_49 {dimension_numbers = #tpu.dot_dimension_numbers<[1], [0], [0], [1], [0, 0, 1, 1], [], []>} : vector<4x32xf32>, vector<32x128xf32>, vector<4x128xf32> -> vector<4x128xf32>
    %172 = arith.addf %170, %171 : vector<4x128xf32>
    %173 = vector.extract_strided_slice %172 {offsets = [0, 0], sizes = [4, 96], strides = [1, 1]} : vector<4x128xf32> to vector<4x96xf32>
    %174 = arith.negf %173 : vector<4x96xf32>
    %175 = math.exp %174 : vector<4x96xf32>
    %cst_50 = arith.constant 1.000000e+00 : f32
    %176 = vector.broadcast %cst_50 : f32 to vector<4x96xf32>
    %177 = arith.addf %176, %175 : vector<4x96xf32>
    %178 = arith.divf %176, %177 : vector<4x96xf32>
    %179 = vector.extract_strided_slice %172 {offsets = [0, 96], sizes = [4, 32], strides = [1, 1]} : vector<4x128xf32> to vector<4x32xf32>
    %180 = math.tanh %179 : vector<4x32xf32>
    %181 = vector.extract_strided_slice %178 {offsets = [0, 32], sizes = [4, 32], strides = [1, 1]} : vector<4x96xf32> to vector<4x32xf32>
    %182 = arith.mulf %181, %162 : vector<4x32xf32>
    %183 = vector.extract_strided_slice %178 {offsets = [0, 0], sizes = [4, 32], strides = [1, 1]} : vector<4x96xf32> to vector<4x32xf32>
    %184 = arith.mulf %183, %180 : vector<4x32xf32>
    %185 = arith.addf %182, %184 : vector<4x32xf32>
    %186 = vector.extract_strided_slice %178 {offsets = [0, 64], sizes = [4, 32], strides = [1, 1]} : vector<4x96xf32> to vector<4x32xf32>
    %187 = math.tanh %185 : vector<4x32xf32>
    %188 = arith.mulf %186, %187 : vector<4x32xf32>
    %c28 = arith.constant 28 : index
    %c0_51 = arith.constant 0 : index
    %189 = vector.load %arg13[%c28, %c0_51] : memref<32x32xf32, #tpu.memory_space<vmem>>, vector<4x32xf32>
    tpu.vector_store %arg13[%c28, %c0_51], %188 {strides = array<i32>} : memref<32x32xf32, #tpu.memory_space<vmem>>, vector<4x32xf32>,
    %c7 = arith.constant 7 : index
    %c0_52 = arith.constant 0 : index
    %c0_53 = arith.constant 0 : index
    %190 = vector.load %arg9[%c7, %c0_52, %c0_53] : memref<8x4x32xf32, #tpu.memory_space<vmem>>, vector<1x4x32xf32>
    %191 = vector.shape_cast %190 : vector<1x4x32xf32> to vector<4x32xf32>
    %192 = vector.shape_cast %188 : vector<4x32xf32> to vector<1x4x32xf32>
    tpu.vector_store %arg9[%c7, %c0_52, %c0_53], %192 {strides = array<i32>} : memref<8x4x32xf32, #tpu.memory_space<vmem>>, vector<1x4x32xf32>,
    %c0_54 = arith.constant 0 : index
    %c0_55 = arith.constant 0 : index
    %193 = vector.load %arg11[%c0_54, %c0_55] : memref<4x32xf32, #tpu.memory_space<vmem>>, vector<4x32xf32>
    tpu.vector_store %arg11[%c0_54, %c0_55], %188 {strides = array<i32>} : memref<4x32xf32, #tpu.memory_space<vmem>>, vector<4x32xf32>,
    %c0_56 = arith.constant 0 : index
    %c0_57 = arith.constant 0 : index
    %194 = vector.load %arg12[%c0_56, %c0_57] : memref<4x32xf32, #tpu.memory_space<vmem>>, vector<4x32xf32>
    tpu.vector_store %arg12[%c0_56, %c0_57], %185 {strides = array<i32>} : memref<4x32xf32, #tpu.memory_space<vmem>>, vector<4x32xf32>,
    %c0_58 = arith.constant 0 : index
    %c0_59 = arith.constant 0 : index
    %195 = vector.load %arg13[%c0_58, %c0_59] : memref<32x32xf32, #tpu.memory_space<vmem>>, vector<32x32xf32>
    %c0_60 = arith.constant 0 : index
    %c0_61 = arith.constant 0 : index
    %196 = vector.load %arg7[%c0_60, %c0_61] : memref<32x8xf32, #tpu.memory_space<vmem>>, vector<32x8xf32>
    %cst_62 = arith.constant dense<0.000000e+00> : vector<32x8xf32>
    %197 = tpu.matmul %195, %196, %cst_62 {dimension_numbers = #tpu.dot_dimension_numbers<[1], [0], [0], [1], [0, 0, 1, 1], [], []>} : vector<32x32xf32>, vector<32x8xf32>, vector<32x8xf32> -> vector<32x8xf32>
    %c0_63 = arith.constant 0 : index
    %c0_64 = arith.constant 0 : index
    %198 = vector.load %arg8[%c0_63, %c0_64] : memref<1x8xf32, #tpu.memory_space<vmem>>, vector<1x8xf32>
    %199 = vector.broadcast %198 : vector<1x8xf32> to vector<32x8xf32>
    %200 = arith.addf %197, %199 : vector<32x8xf32>
    %c0_65 = arith.constant 0 : index
    %c0_66 = arith.constant 0 : index
    %201 = vector.load %arg10[%c0_65, %c0_66] : memref<32x8xf32, #tpu.memory_space<vmem>>, vector<32x8xf32>
    tpu.vector_store %arg10[%c0_65, %c0_66], %200 {strides = array<i32>} : memref<32x8xf32, #tpu.memory_space<vmem>>, vector<32x8xf32>,
    return
  }
  func.func @transform_0(%arg0: i32) -> (i32, i32) {
    %c0_i32 = arith.constant 0 : i32
    %c0_i32_0 = arith.constant 0 : i32
    %c0_i32_1 = arith.constant 0 : i32
    return %c0_i32, %c0_i32_0 : i32, i32
  }
  func.func @transform_1(%arg0: i32) -> (i32, i32) {
    %c0_i32 = arith.constant 0 : i32
    %c0_i32_0 = arith.constant 0 : i32
    %c0_i32_1 = arith.constant 0 : i32
    return %c0_i32, %c0_i32_0 : i32, i32
  }
  func.func @transform_2(%arg0: i32) -> (i32, i32) {
    %c0_i32 = arith.constant 0 : i32
    %c0_i32_0 = arith.constant 0 : i32
    %c0_i32_1 = arith.constant 0 : i32
    return %c0_i32, %c0_i32_0 : i32, i32
  }
  func.func @transform_3(%arg0: i32) -> (i32, i32) {
    %c0_i32 = arith.constant 0 : i32
    %c0_i32_0 = arith.constant 0 : i32
    %c0_i32_1 = arith.constant 0 : i32
    return %c0_i32, %c0_i32_0 : i32, i32
  }
  func.func @transform_4(%arg0: i32) -> (i32, i32) {
    %c0_i32 = arith.constant 0 : i32
    %c0_i32_0 = arith.constant 0 : i32
    %c0_i32_1 = arith.constant 0 : i32
    return %c0_i32, %c0_i32_0 : i32, i32
  }
  func.func @transform_5(%arg0: i32) -> (i32, i32) {
    %c0_i32 = arith.constant 0 : i32
    %c0_i32_0 = arith.constant 0 : i32
    %c0_i32_1 = arith.constant 0 : i32
    return %c0_i32, %c0_i32_0 : i32, i32
  }
  func.func @transform_6(%arg0: i32) -> (i32, i32) {
    %c0_i32 = arith.constant 0 : i32
    %c0_i32_0 = arith.constant 0 : i32
    %c0_i32_1 = arith.constant 0 : i32
    return %c0_i32, %c0_i32_0 : i32, i32
  }
  func.func @transform_7(%arg0: i32) -> (i32, i32) {
    %c0_i32 = arith.constant 0 : i32
    %c0_i32_0 = arith.constant 0 : i32
    %c0_i32_1 = arith.constant 0 : i32
    return %c0_i32, %c0_i32_0 : i32, i32
  }
  func.func @transform_8(%arg0: i32) -> (i32, i32, i32) {
    %c0_i32 = arith.constant 0 : i32
    %c0_i32_0 = arith.constant 0 : i32
    %c0_i32_1 = arith.constant 0 : i32
    %c0_i32_2 = arith.constant 0 : i32
    return %c0_i32, %c0_i32_0, %c0_i32_1 : i32, i32, i32
  }
  func.func @transform_9(%arg0: i32) -> (i32, i32) {
    %c0_i32 = arith.constant 0 : i32
    %c0_i32_0 = arith.constant 0 : i32
    %c0_i32_1 = arith.constant 0 : i32
    return %c0_i32, %c0_i32_0 : i32, i32
  }
  func.func @transform_10(%arg0: i32) -> (i32, i32) {
    %c0_i32 = arith.constant 0 : i32
    %c0_i32_0 = arith.constant 0 : i32
    %c0_i32_1 = arith.constant 0 : i32
    return %c0_i32, %c0_i32_0 : i32, i32
  }
  func.func @transform_11(%arg0: i32) -> (i32, i32) {
    %c0_i32 = arith.constant 0 : i32
    %c0_i32_0 = arith.constant 0 : i32
    %c0_i32_1 = arith.constant 0 : i32
    return %c0_i32, %c0_i32_0 : i32, i32
  }
}

</mosaic_0001>

<bundles_post_ra>
// kernel: decoder_forward.1
= control target key start
LH: loop header
LB: loop body
LE: loop exit
PB: predicated region body
PF: predicated region fallthrough
CT: control target
= control target key end

     0   :  { %17 = vsyncpa [#allocation4], 0  ;;  %s1895_s0 = inlined_call_operand.vmem [shape: f32[32,16], index: 0, kind: input, shape index: {}]   ;;  %s1896_s1 = inlined_call_operand.vmem [shape: f32[4,32], index: 1, kind: input, shape index: {}]   ;;  %s1897_s2 = inlined_call_operand.vmem [shape: f32[4,32], index: 2, kind: input, shape index: {}]   ;;  %s1898_s3 = inlined_call_operand.vmem [shape: f32[16,128], index: 3, kind: input, shape index: {}]   ;;  %s1899_s4 = inlined_call_operand.vmem [shape: f32[32,128], index: 4, kind: input, shape index: {}]   ;;  %s1900_s5 = inlined_call_operand.vmem [shape: f32[1,128], index: 5, kind: input, shape index: {}]   ;;  %s1901_s6 = inlined_call_operand.vmem [shape: f32[32,8], index: 6, kind: input, shape index: {}]   ;;  %s1902_s7 = inlined_call_operand.vmem [shape: f32[1,8], index: 7, kind: input, shape index: {}]   ;;  %s1903_s8 = inlined_call_operand.hbm [shape: f32[8,4,32], index: 8, kind: output, shape index: {0}]   ;;  %s1904_s9 = inlined_call_operand.hbm [shape: f32[32,8], index: 9, kind: output, shape index: {1}]   ;;  %s1905_s10 = inlined_call_operand.hbm [shape: f32[4,32], index: 10, kind: output, shape index: {2}]   ;;  %s1906_s11 = inlined_call_operand.hbm [shape: f32[4,32], index: 11, kind: output, shape index: {3}]  }
   0x1   :  { %18 = vsyncpa [#allocation6], 0  ;;  %v41_v0 = vld [vmem:[%s1898_s3 + $0x8] sm:$0xff]  ;;  %v1648_v1 = vld [vmem:[%s1899_s4 + $0x18] sm:$0xff]  ;;  %v1570_v3 = vmov 0.0   ;;  %vm49_vm0 = vcmask 130048  }
   0x2   :  { %v40_v2 = vld [vmem:[%s1898_s3] sm:$0xff]  ;;  %1296 = vmatprep.subr.mxu0 %v41_v0  ;;  %1306 = vmatprep.subr.mxu1 %v1570_v3  ;;  %v1661_v5 = vld [vmem:[%s1899_s4 + $0x10] sm:$0xff]  ;;  %v37_v6 = vld [vmem:[%s1895_s0 + $0x8] sm:$0xff] }
   0x3   :  { %v36_v4 = vld [vmem:[%s1895_s0] sm:$0xff]  ;;  %1297 = vmatpush3.msra.mxu0 %v41_v0  ;;  %1307 = vmatpush3.msra.mxu1 %v1648_v1 }
   0x4   :  { %1298 = vmatprep.subr.mxu0 %v40_v2  ;;  %1308 = vmatprep.subr.mxu1 %v1570_v3 }
   0x5   :  { %19 = vsyncpa [#allocation9], 0  ;;  %1299 = vmatpush3.msra.mxu0 %v40_v2  ;;  %1300 = vmatprep.mubr.msk.f32.mxu0 %vm49_vm0, %v36_v4  ;;  %v1671_v7 = vld [vmem:[%s1899_s4 + $0x8] sm:$0xff]  ;;  %v1679_v8 = vld [vmem:[%s1899_s4] sm:$0xff]  ;;  %vm1571_vm1 = vmmov 0   ;;  %vm153_vm2 = vcmask 261120  }
   0x6   :  { %1309 = vmatpush3.msra.mxu1 %v1661_v5  ;;  %1301 = vmatmul.mubr.msk.f32.vlgmr.msra.gmra.mxu0 %vm49_vm0, %v37_v6  ;;  %v151_v9 = vld [vmem:[%s1896_s1] sm:$0xf]  ;;  %s1572_s15 = smov 32   ;;  %v38_v29 = vld [vmem:[%s1895_s0 + $0x10] sm:$0xff]  ;;  %v39_v30 = vld [vmem:[%s1895_s0 + $0x18] sm:$0xff]  ;;  %s1573_s20 = smov 64  }
   0x7   :  { %1310 = vmatprep.subr.mxu1 %v1570_v3  ;;  %1314 = vmatprep.mubr.msk.f32.mxu1 %vm1571_vm1, %v1570_v3  ;;  %v1715_v11 = vld [vmem:[%s1900_s5] ss:$0 sm:$0xff]  ;;  %vm260_vm3 = vcmask 257024   ;;  %vm370_vm4 = vcmask 261124   ;;  %s1574_s0 = smov 96  }
   0x8   :  { %1311 = vmatpush3.msra.mxu1 %v1671_v7  ;;  %1317 = vmatprep.subr.mxu0 %v1570_v3  ;;  %v152_v18 = vld [vmem:[%s1897_s2] sm:$0xf] }
   0x9   :  { %1312 = vmatprep.subr.mxu1 %v1570_v3  ;;  %1318 = vmatpush3.msra.mxu0 %v1648_v1 }
   0xa   :  { %1313 = vmatpush3.msra.mxu1 %v1679_v8  ;;  %1319 = vmatprep.subr.mxu0 %v1570_v3 }
   0xb   :  { %1315 = vmatmul.mubr.msk.f32.vlgmr.msra.gmra.mxu1 %vm153_vm2, %v151_v9  ;;  %1320 = vmatpush3.msra.mxu0 %v1661_v5 }
   0xc   :  { %1321 = vmatprep.subr.mxu0 %v1570_v3  ;;  %1328 = vmatprep.subr.mxu1 %v1570_v3 }
   0xd   :  { %1322 = vmatpush3.msra.mxu0 %v1671_v7  ;;  %1329 = vmatpush3.msra.mxu1 %v1648_v1 }
   0xe   :  { %1323 = vmatprep.subr.mxu0 %v1570_v3  ;;  %1330 = vmatprep.subr.mxu1 %v1570_v3 }
   0xf   :  { %1324 = vmatpush3.msra.mxu0 %v1679_v8  ;;  %1331 = vmatpush3.msra.mxu1 %v1661_v5 }
  0x10   :  { %1332 = vmatprep.subr.mxu1 %v1570_v3  ;;  %1336 = vmatprep.mubr.msk.f32.mxu1 %vm1571_vm1, %v1570_v3 }
  0x11   :  { %1333 = vmatpush3.msra.mxu1 %v1671_v7  ;;  %1339 = vmatprep.subr.mxu0 %v1570_v3 }
  0x12   :  { %1334 = vmatprep.subr.mxu1 %v1570_v3  ;;  %1303 = vmatprep.mubr.msk.f32.mxu0 %vm49_vm0, %v38_v29 }
  0x13   :  { %1335 = vmatpush3.msra.mxu1 %v1679_v8  ;;  %1304 = vmatmul.mubr.msk.f32.gmra.mxu0 %vm49_vm0, %v39_v30 }
  0x14   :  { %1350 = vmatprep.subr.mxu1 %v1570_v3  ;;  %1325 = vmatprep.mubr.msk.f32.mxu0 %vm1571_vm1, %v1570_v3 }
  0xc6   :  { %v1710_v10 = vpop.f32.mrf.mxu0 }
  0xc7   :  { %v134_v57 = vadd.f32 %v1710_v10, %v1715_v11 }
  0xc8   :  { %v128_v12 = vpop.f32.mrf.mxu0 }
  0xc9   :  { %v129_v13 = vadd.f32 %v1715_v11, %v128_v12 }
  0xcb   :  { %v223_v14 = vpop.f32.mrf.mxu1 }
  0xcc   :  { %v227_v15 = vadd.f32 %v223_v14, %v129_v13 }
  0xcd   :  { %v1316_v16 = vpop.f32.mrf.mxu1 }
  0xce   :  { %1420 = vtanh.f32 %v227_v15  ;;  %v1222_v19 = vmul.f32 -1.442695, %v227_v15 }
  0xd0   :  { %1422 = vpow2.f32 %v1222_v19 }
  0xd3   :  { %v1749_v35 = vpop.f32.mrf.mxu0 }
  0xd5   :  { %v1751_v36 = vpop.f32.mrf.mxu0 }
  0xdb   :  { %v1421_v17 = vpop.eup %1420 }
  0xdc   :  { %241 = vrot.lane.b32.xlu0 %v1421_v17, %s1572_s15 }
  0xdd   :  { %v1423_v20 = vpop.eup %1422 }
  0xde   :  { %v231_v21 = vadd.f32 1.0, %v1423_v20 }
  0xe0   :  { %236 = vrot.lane.b32.xlu0 %v152_v18, %s1572_s15  ;;  %1424 = vrcp.f32 %v231_v21 }
  0xed   :  { %v1425_v22 = vpop.eup %1424 }
 0x14e   :  { %v242_v23 = vpop.permute.xlu0 %241 }
 0x14f   :  { %v244_v24 = vmul.f32 %v1425_v22, %v242_v23 }
 0x151   :  { %246 = vrot.lane.b32.xlu1 %v244_v24, %s1572_s15 }
 0x152   :  { %v237_v25 = vpop.permute.xlu0 %236 }
 0x153   :  { %v239_v26 = vmul.f32 %v1425_v22, %v237_v25 }
 0x1c3   :  { %v247_v27 = vpop.permute.xlu1 %246 }
 0x1c4   :  { %v249_v28 = vadd.f32 %v247_v27, %v239_v26 }
 0x1c6   :  { %1426 = vtanh.f32 %v249_v28  ;;  %v347_v48 = vrot.slane %v249_v28, 4 }
 0x1d3   :  { %v1427_v31 = vpop.eup %1426 }
 0x1d4   :  { %252 = vrot.lane.b32.xlu1 %v1427_v31, %s1572_s15 }
 0x246   :  { %v253_v32 = vpop.permute.xlu1 %252 }
 0x247   :  { %v255_v33 = vmul.f32 %v1425_v22, %v253_v32 }
 0x249   :  { %257 = vrot.lane.b32.xlu0 %v255_v33, %s1573_s20 }
 0x2bb   :  { %v258_v34 = vpop.permute.xlu0 %257 }
 0x2bc   :  { %261 = vst.msk [vmem:[#allocation2] sm:$0xf] %vm260_vm3, %v258_v34  ;;  %262 = vst.msk [vmem:[#allocation3] sm:$0xf] %vm260_vm3, %v258_v34  ;;  %1326 = vmatmul.mubr.msk.f32.vlgmr.msra.gmra.mxu0 %vm153_vm2, %v258_v34 }
 0x2bd   :  { %1340 = vmatpush3.msra.mxu0 %v1648_v1  ;;  %1347 = vmatprep.mubr.msk.f32.mxu0 %vm1571_vm1, %v1570_v3 }
 0x2be   :  { %1341 = vmatprep.subr.mxu0 %v1570_v3 }
 0x2bf   :  { %1342 = vmatpush3.msra.mxu0 %v1661_v5 }
 0x2c0   :  { %1343 = vmatprep.subr.mxu0 %v1570_v3 }
 0x2c1   :  { %1344 = vmatpush3.msra.mxu0 %v1671_v7 }
 0x2c2   :  { %1345 = vmatprep.subr.mxu0 %v1570_v3 }
 0x2c3   :  { %1346 = vmatpush3.msra.mxu0 %v1679_v8 }
 0x2c4   :  { %1361 = vmatprep.subr.mxu0 %v1570_v3 }
 0x37c   :  { %v331_v37 = vpop.f32.mrf.mxu0 }
 0x37d   :  { %v336_v38 = vrot.slane %v331_v37, 4 }
 0x37e   :  { %v1327_v39 = vpop.f32.mrf.mxu0 }
 0x37f   :  { %v338_v40 = vadd.f32 %v336_v38, %v129_v13 }
 0x381   :  { %1428 = vtanh.f32 %v338_v40  ;;  %v1224_v42 = vmul.f32 -1.442695, %v338_v40  ;;  %v139_v40 = vadd.f32 %v1715_v11, %v1751_v36 }
 0x383   :  { %1430 = vpow2.f32 %v1224_v42 }
 0x38e   :  { %v1429_v41 = vpop.eup %1428 }
 0x38f   :  { %351 = vrot.lane.b32.xlu1 %v1429_v41, %s1572_s15 }
 0x390   :  { %v1431_v43 = vpop.eup %1430 }
 0x391   :  { %v342_v44 = vadd.f32 1.0, %v1431_v43 }
 0x393   :  { %1432 = vrcp.f32 %v342_v44 }
 0x3a0   :  { %v1433_v45 = vpop.eup %1432 }
 0x3a1   :  { %v349_v49 = vmul.f32 %v1433_v45, %v347_v48 }
 0x401   :  { %v352_v46 = vpop.permute.xlu1 %351 }
 0x402   :  { %v354_v47 = vmul.f32 %v1433_v45, %v352_v46 }
 0x404   :  { %356 = vrot.lane.b32.xlu0 %v354_v47, %s1572_s15 }
 0x476   :  { %v357_v50 = vpop.permute.xlu0 %356 }
 0x477   :  { %v359_v51 = vadd.f32 %v357_v50, %v349_v49 }
 0x479   :  { %1434 = vtanh.f32 %v359_v51  ;;  %v458_v9 = vrot.slane %v359_v51, 4 }
 0x486   :  { %v1435_v52 = vpop.eup %1434 }
 0x487   :  { %362 = vrot.lane.b32.xlu1 %v1435_v52, %s1572_s15 }
 0x4f9   :  { %v363_v53 = vpop.permute.xlu1 %362 }
 0x4fa   :  { %v1756_v54 = vmul.f32 %v1433_v45, %v363_v53 }
 0x4fc   :  { %v374_v55 = vrot.slane %v1756_v54, 4 }
 0x4fe   :  { %375 = vrot.lane.b32.xlu0 %v374_v55, %s1573_s20 }
 0x570   :  { %v376_v56 = vpop.permute.xlu0 %375 }
 0x571   :  { %1337 = vmatmul.mubr.msk.f32.vlgmr.msra.gmra.mxu1 %vm153_vm2, %v376_v56 }
 0x572   :  { %1351 = vmatpush3.msra.mxu1 %v1648_v1  ;;  %1358 = vmatprep.mubr.msk.f32.mxu1 %vm1571_vm1, %v1570_v3 }
 0x573   :  { %1352 = vmatprep.subr.mxu1 %v1570_v3 }
 0x574   :  { %1353 = vmatpush3.msra.mxu1 %v1661_v5 }
 0x575   :  { %1354 = vmatprep.subr.mxu1 %v1570_v3 }
 0x576   :  { %1355 = vmatpush3.msra.mxu1 %v1671_v7 }
 0x577   :  { %1356 = vmatprep.subr.mxu1 %v1570_v3 }
 0x578   :  { %1357 = vmatpush3.msra.mxu1 %v1679_v8 }
 0x579   :  { %1372 = vmatprep.subr.mxu1 %v1570_v3 }
 0x631   :  { %v445_v58 = vpop.f32.mrf.mxu1 }
 0x632   :  { %v449_v59 = vadd.f32 %v445_v58, %v134_v57 }
 0x633   :  { %v1338_v60 = vpop.f32.mrf.mxu1 }
 0x634   :  { %1436 = vtanh.f32 %v449_v59  ;;  %v1226_v62 = vmul.f32 -1.442695, %v449_v59 }
 0x636   :  { %1438 = vpow2.f32 %v1226_v62 }
 0x641   :  { %v1437_v61 = vpop.eup %1436 }
 0x642   :  { %462 = vrot.lane.b32.xlu1 %v1437_v61, %s1572_s15 }
 0x643   :  { %v1439_v63 = vpop.eup %1438 }
 0x644   :  { %v453_v0 = vadd.f32 1.0, %v1439_v63 }
 0x646   :  { %1440 = vrcp.f32 %v453_v0 }
 0x653   :  { %v1441_v2 = vpop.eup %1440 }
 0x654   :  { %v460_v12 = vmul.f32 %v1441_v2, %v458_v9 }
 0x6b4   :  { %v463_v4 = vpop.permute.xlu1 %462 }
 0x6b5   :  { %v465_v6 = vmul.f32 %v1441_v2, %v463_v4 }
 0x6b7   :  { %467 = vrot.lane.b32.xlu0 %v465_v6, %s1572_s15 }
 0x729   :  { %v468_v10 = vpop.permute.xlu0 %467 }
 0x72a   :  { %v470_v13 = vadd.f32 %v468_v10, %v460_v12 }
 0x72c   :  { %1442 = vtanh.f32 %v470_v13  ;;  %v568_v29 = vrot.slane %v470_v13, 4 }
 0x739   :  { %v1443_v14 = vpop.eup %1442 }
 0x73a   :  { %473 = vrot.lane.b32.xlu1 %v1443_v14, %s1572_s15 }
 0x7ac   :  { %v474_v15 = vpop.permute.xlu1 %473 }
 0x7ad   :  { %v476_v16 = vmul.f32 %v1441_v2, %v474_v15 }
 0x7af   :  { %478 = vrot.lane.b32.xlu0 %v476_v16, %s1573_s20  ;;  %v144_v16 = vadd.f32 %v1749_v35, %v1715_v11 }
 0x821   :  { %v479_v17 = vpop.permute.xlu0 %478 }
 0x822   :  { %481 = vst.msk [vmem:[#allocation2 + $0x8] sm:$0xf] %vm260_vm3, %v479_v17  ;;  %483 = vst.msk [vmem:[#allocation3 + $0x8] sm:$0xf] %vm260_vm3, %v479_v17  ;;  %1348 = vmatmul.mubr.msk.f32.vlgmr.msra.gmra.mxu0 %vm153_vm2, %v479_v17 }
 0x823   :  { %1362 = vmatpush3.msra.mxu0 %v1648_v1  ;;  %1369 = vmatprep.mubr.msk.f32.mxu0 %vm1571_vm1, %v1570_v3 }
 0x824   :  { %1363 = vmatprep.subr.mxu0 %v1570_v3 }
 0x825   :  { %1364 = vmatpush3.msra.mxu0 %v1661_v5 }
 0x826   :  { %1365 = vmatprep.subr.mxu0 %v1570_v3 }
 0x827   :  { %1366 = vmatpush3.msra.mxu0 %v1671_v7 }
 0x828   :  { %1367 = vmatprep.subr.mxu0 %v1570_v3 }
 0x829   :  { %1368 = vmatpush3.msra.mxu0 %v1679_v8 }
 0x82a   :  { %1383 = vmatprep.subr.mxu0 %v1570_v3 }
 0x8e2   :  { %v552_v18 = vpop.f32.mrf.mxu0 }
 0x8e3   :  { %v557_v19 = vrot.slane %v552_v18, 4 }
 0x8e4   :  { %v1349_v20 = vpop.f32.mrf.mxu0 }
 0x8e5   :  { %v559_v21 = vadd.f32 %v557_v19, %v134_v57 }
 0x8e7   :  { %1444 = vtanh.f32 %v559_v21  ;;  %v1228_v23 = vmul.f32 -1.442695, %v559_v21 }
 0x8e9   :  { %1446 = vpow2.f32 %v1228_v23 }
 0x8f4   :  { %v1445_v22 = vpop.eup %1444 }
 0x8f5   :  { %572 = vrot.lane.b32.xlu1 %v1445_v22, %s1572_s15 }
 0x8f6   :  { %v1447_v24 = vpop.eup %1446 }
 0x8f7   :  { %v563_v25 = vadd.f32 1.0, %v1447_v24 }
 0x8f9   :  { %1448 = vrcp.f32 %v563_v25 }
 0x906   :  { %v1449_v26 = vpop.eup %1448 }
 0x907   :  { %v570_v30 = vmul.f32 %v1449_v26, %v568_v29 }
 0x967   :  { %v573_v27 = vpop.permute.xlu1 %572 }
 0x968   :  { %v575_v28 = vmul.f32 %v1449_v26, %v573_v27 }
 0x96a   :  { %577 = vrot.lane.b32.xlu0 %v575_v28, %s1572_s15 }
 0x9dc   :  { %v578_v31 = vpop.permute.xlu0 %577 }
 0x9dd   :  { %v580_v32 = vadd.f32 %v578_v31, %v570_v30 }
 0x9df   :  { %1450 = vtanh.f32 %v580_v32  ;;  %v678_v51 = vrot.slane %v580_v32, 4 }
 0x9ec   :  { %v1451_v33 = vpop.eup %1450 }
 0x9ed   :  { %583 = vrot.lane.b32.xlu1 %v1451_v33, %s1572_s15 }
 0xa5f   :  { %v584_v34 = vpop.permute.xlu1 %583 }
 0xa60   :  { %v1793_v37 = vmul.f32 %v1449_v26, %v584_v34 }
 0xa62   :  { %v594_v38 = vrot.slane %v1793_v37, 4 }
 0xa64   :  { %595 = vrot.lane.b32.xlu0 %v594_v38, %s1573_s20 }
 0xad6   :  { %v596_v39 = vpop.permute.xlu0 %595 }
 0xad7   :  { %1359 = vmatmul.mubr.msk.f32.vlgmr.msra.gmra.mxu1 %vm153_vm2, %v596_v39 }
 0xad8   :  { %1373 = vmatpush3.msra.mxu1 %v1648_v1  ;;  %1380 = vmatprep.mubr.msk.f32.mxu1 %vm1571_vm1, %v1570_v3 }
 0xad9   :  { %1374 = vmatprep.subr.mxu1 %v1570_v3 }
 0xada   :  { %1375 = vmatpush3.msra.mxu1 %v1661_v5 }
 0xadb   :  { %1376 = vmatprep.subr.mxu1 %v1570_v3 }
 0xadc   :  { %1377 = vmatpush3.msra.mxu1 %v1671_v7 }
 0xadd   :  { %1378 = vmatprep.subr.mxu1 %v1570_v3 }
 0xade   :  { %1379 = vmatpush3.msra.mxu1 %v1679_v8 }
 0xb97   :  { %v665_v41 = vpop.f32.mrf.mxu1 }
 0xb98   :  { %v669_v42 = vadd.f32 %v665_v41, %v139_v40 }
 0xb99   :  { %v1360_v43 = vpop.f32.mrf.mxu1 }
 0xb9a   :  { %1452 = vtanh.f32 %v669_v42  ;;  %v1230_v45 = vmul.f32 -1.442695, %v669_v42 }
 0xb9c   :  { %1454 = vpow2.f32 %v1230_v45 }
 0xba7   :  { %v1453_v44 = vpop.eup %1452 }
 0xba8   :  { %682 = vrot.lane.b32.xlu1 %v1453_v44, %s1572_s15 }
 0xba9   :  { %v1455_v46 = vpop.eup %1454 }
 0xbaa   :  { %v673_v47 = vadd.f32 1.0, %v1455_v46 }
 0xbac   :  { %1456 = vrcp.f32 %v673_v47 }
 0xbb9   :  { %v1457_v48 = vpop.eup %1456 }
 0xbba   :  { %v680_v52 = vmul.f32 %v1457_v48, %v678_v51 }
 0xc1a   :  { %v683_v49 = vpop.permute.xlu1 %682 }
 0xc1b   :  { %v685_v50 = vmul.f32 %v1457_v48, %v683_v49 }
 0xc1d   :  { %687 = vrot.lane.b32.xlu0 %v685_v50, %s1572_s15 }
 0xc8f   :  { %v688_v36 = vpop.permute.xlu0 %687 }
 0xc90   :  { %v690_v53 = vadd.f32 %v688_v36, %v680_v52  ;;  %v1047_v52 = vld [vmem:[%s1901_s6 + $0x18] sm:$0xff]  ;;  %v1046_v36 = vld [vmem:[%s1901_s6 + $0x10] sm:$0xff] }
 0xc91   :  { %1394 = vmatprep.subr.mxu1 %v1047_v52 }
 0xc92   :  { %1458 = vtanh.f32 %v690_v53 }
 0xc9f   :  { %v1459_v55 = vpop.eup %1458 }
 0xca0   :  { %693 = vrot.lane.b32.xlu1 %v1459_v55, %s1572_s15  ;;  %v1044_v55 = vld [vmem:[%s1901_s6] sm:$0xff] }
 0xd12   :  { %v694_v56 = vpop.permute.xlu1 %693 }
 0xd13   :  { %v696_v57 = vmul.f32 %v1457_v48, %v694_v56 }
 0xd15   :  { %698 = vrot.lane.b32.xlu0 %v696_v57, %s1573_s20 }
 0xd87   :  { %v699_v58 = vpop.permute.xlu0 %698 }
 0xd88   :  { %701 = vst.msk [vmem:[#allocation2 + $0x10] sm:$0xf] %vm260_vm3, %v699_v58  ;;  %703 = vst.msk [vmem:[#allocation3 + $0x10] sm:$0xf] %vm260_vm3, %v699_v58  ;;  %1370 = vmatmul.mubr.msk.f32.vlgmr.msra.gmra.mxu0 %vm153_vm2, %v699_v58 }
 0xd89   :  { %1384 = vmatpush3.msra.mxu0 %v1648_v1  ;;  %1391 = vmatprep.mubr.msk.f32.mxu0 %vm1571_vm1, %v1570_v3 }
 0xd8a   :  { %1385 = vmatprep.subr.mxu0 %v1570_v3 }
 0xd8b   :  { %1386 = vmatpush3.msra.mxu0 %v1661_v5 }
 0xd8c   :  { %1387 = vmatprep.subr.mxu0 %v1570_v3 }
 0xd8d   :  { %1388 = vmatpush3.msra.mxu0 %v1671_v7 }
 0xd8e   :  { %1389 = vmatprep.subr.mxu0 %v1570_v3  ;;  %v788_v3 = vrot.slane %v690_v53, 4  ;;  %v1045_v53 = vld [vmem:[%s1901_s6 + $0x8] sm:$0xff]  ;;  %s1575_s6 = smov [#allocation3]  }
 0xd8f   :  { %1390 = vmatpush3.msra.mxu0 %v1679_v8  ;;  %s1162_s3 = sshll.u32 %s1575_s6, 4  ;;  %s1163_s3 = int_to_ptr.vmem [resolvable:$true] %s1162_s3 }
 0xd90   :  { %s1484_s29 = scalar_lea.vmem %s1163_s3, 512  ;;  %p1489_p1 = scmp.lt.s32.totalorder %s1163_s3, %s1163_s3 }
 0xd91   :  { %p1485_p0 = scmp.ne.s32.totalorder %s1163_s3, %s1484_s29  ;;  %p1490_p2 = scmp.lt.s32.totalorder %s1484_s29, %s1484_s29 }
 0xd93   :  { %p1491_p3 = por %p1490_p2, %p1489_p1 }
 0xd95   :  { %p1492_p4 = pnand %p1491_p3, %p1485_p0 }
 0xe48   :  { %v772_v59 = vpop.f32.mrf.mxu0 }
 0xe49   :  { %v777_v60 = vrot.slane %v772_v59, 4 }
 0xe4a   :  { %v1371_v61 = vpop.f32.mrf.mxu0 }
 0xe4b   :  { %v779_v62 = vadd.f32 %v777_v60, %v139_v40 }
 0xe4d   :  { %1460 = vtanh.f32 %v779_v62  ;;  %v1232_v63 = vmul.f32 -1.442695, %v779_v62 }
 0xe4f   :  { %1462 = vpow2.f32 %v1232_v63 }
 0xe5a   :  { %v1461_v1 = vpop.eup %1460 }
 0xe5b   :  { %792 = vrot.lane.b32.xlu1 %v1461_v1, %s1572_s15 }
 0xe5c   :  { %v1463_v0 = vpop.eup %1462 }
 0xe5d   :  { %v783_v5 = vadd.f32 1.0, %v1463_v0 }
 0xe5f   :  { %1464 = vrcp.f32 %v783_v5 }
 0xe6c   :  { %v1465_v2 = vpop.eup %1464 }
 0xe6d   :  { %v790_v8 = vmul.f32 %v1465_v2, %v788_v3 }
 0xecd   :  { %v793_v4 = vpop.permute.xlu1 %792 }
 0xece   :  { %v795_v7 = vmul.f32 %v1465_v2, %v793_v4 }
 0xed0   :  { %797 = vrot.lane.b32.xlu0 %v795_v7, %s1572_s15 }
 0xf42   :  { %v798_v6 = vpop.permute.xlu0 %797 }
 0xf43   :  { %v800_v9 = vadd.f32 %v798_v6, %v790_v8 }
 0xf45   :  { %1466 = vtanh.f32 %v800_v9  ;;  %v898_v27 = vrot.slane %v800_v9, 4 }
 0xf52   :  { %v1467_v12 = vpop.eup %1466 }
 0xf53   :  { %803 = vrot.lane.b32.xlu1 %v1467_v12, %s1572_s15 }
 0xfc5   :  { %v804_v10 = vpop.permute.xlu1 %803 }
 0xfc6   :  { %v806_v13 = vmul.f32 %v1465_v2, %v804_v10 }
 0xfc8   :  { %v814_v14 = vrot.slane %v806_v13, 4 }
 0xfca   :  { %815 = vrot.lane.b32.xlu0 %v814_v14, %s1573_s20 }
0x103c   :  { %v816_v15 = vpop.permute.xlu0 %815 }
0x103d   :  { %1381 = vmatmul.mubr.msk.f32.vlgmr.msra.gmra.mxu1 %vm153_vm2, %v816_v15 }
0x103e   :  { %1395 = vmatpush3.msra.mxu1 %v1047_v52 }
0x103f   :  { %1396 = vmatprep.subr.mxu1 %v1046_v36 }
0x1040   :  { %1397 = vmatpush3.msra.mxu1 %v1046_v36 }
0x1041   :  { %1398 = vmatprep.subr.mxu1 %v1045_v53 }
0x1042   :  { %1399 = vmatpush3.msra.mxu1 %v1045_v53 }
0x1043   :  { %1400 = vmatprep.subr.mxu1 %v1044_v55 }
0x1044   :  { %1401 = vmatpush3.msra.mxu1 %v1044_v55 }
0x10fd   :  { %v885_v17 = vpop.f32.mrf.mxu1 }
0x10fe   :  { %v889_v18 = vadd.f32 %v885_v17, %v144_v16 }
0x10ff   :  { %v1382_v19 = vpop.f32.mrf.mxu1 }
0x1100   :  { %1468 = vtanh.f32 %v889_v18  ;;  %v1234_v21 = vmul.f32 -1.442695, %v889_v18 }
0x1102   :  { %1470 = vpow2.f32 %v1234_v21 }
0x110d   :  { %v1469_v20 = vpop.eup %1468 }
0x110e   :  { %902 = vrot.lane.b32.xlu1 %v1469_v20, %s1572_s15 }
0x110f   :  { %v1471_v22 = vpop.eup %1470 }
0x1110   :  { %v893_v23 = vadd.f32 1.0, %v1471_v22 }
0x1112   :  { %1472 = vrcp.f32 %v893_v23 }
0x111f   :  { %v1473_v24 = vpop.eup %1472 }
0x1120   :  { %v900_v28 = vmul.f32 %v1473_v24, %v898_v27 }
0x1180   :  { %v903_v25 = vpop.permute.xlu1 %902 }
0x1181   :  { %v905_v26 = vmul.f32 %v1473_v24, %v903_v25 }
0x1183   :  { %907 = vrot.lane.b32.xlu0 %v905_v26, %s1572_s15 }
0x11f5   :  { %v908_v11 = vpop.permute.xlu0 %907 }
0x11f6   :  { %v910_v35 = vadd.f32 %v908_v11, %v900_v28 }
0x11f8   :  { %1474 = vtanh.f32 %v910_v35  ;;  %v1008_v47 = vrot.slane %v910_v35, 4 }
0x1205   :  { %v1475_v29 = vpop.eup %1474 }
0x1206   :  { %913 = vrot.lane.b32.xlu1 %v1475_v29, %s1572_s15 }
0x1278   :  { %v914_v30 = vpop.permute.xlu1 %913 }
0x1279   :  { %v916_v31 = vmul.f32 %v1473_v24, %v914_v30 }
0x127b   :  { %918 = vrot.lane.b32.xlu0 %v916_v31, %s1573_s20 }
0x12ed   :  { %v919_v32 = vpop.permute.xlu0 %918 }
0x12ee   :  { %921 = vst.msk [vmem:[#allocation2 + $0x18] sm:$0xf] %vm260_vm3, %v919_v32  ;;  %923 = vst.msk [vmem:[#allocation3 + $0x18] sm:$0xf] %vm260_vm3, %v919_v32  ;;  %1392 = vmatmul.mubr.msk.f32.vlgmr.msra.gmra.mxu0 %vm153_vm2, %v919_v32 }
0x13ae   :  { %v992_v33 = vpop.f32.mrf.mxu0 }
0x13af   :  { %v997_v34 = vrot.slane %v992_v33, 4 }
0x13b0   :  { %v1393_v38 = vpop.f32.mrf.mxu0 }
0x13b1   :  { %v999_v39 = vadd.f32 %v997_v34, %v144_v16 }
0x13b3   :  { %1476 = vtanh.f32 %v999_v39  ;;  %v1236_v41 = vmul.f32 -1.442695, %v999_v39 }
0x13b5   :  { %1478 = vpow2.f32 %v1236_v41 }
0x13c0   :  { %v1477_v40 = vpop.eup %1476 }
0x13c1   :  { %1012 = vrot.lane.b32.xlu1 %v1477_v40, %s1572_s15 }
0x13c2   :  { %v1479_v42 = vpop.eup %1478 }
0x13c3   :  { %v1003_v43 = vadd.f32 1.0, %v1479_v42 }
0x13c5   :  { %1480 = vrcp.f32 %v1003_v43 }
0x13d2   :  { %v1481_v44 = vpop.eup %1480 }
0x13d3   :  { %v1010_v48 = vmul.f32 %v1481_v44, %v1008_v47 }
0x1433   :  { %v1013_v45 = vpop.permute.xlu1 %1012 }
0x1434   :  { %v1015_v46 = vmul.f32 %v1481_v44, %v1013_v45 }
0x1436   :  { %1017 = vrot.lane.b32.xlu0 %v1015_v46, %s1572_s15 }
0x143a   :  { %367 = vrot.lane.b32.xlu0 %v1756_v54, %s1573_s20 }
0x143e   :  { %808 = vrot.lane.b32.xlu0 %v806_v13, %s1573_s20 }
0x14a8   :  { %v1018_v49 = vpop.permute.xlu0 %1017 }
0x14a9   :  { %v1020_v50 = vadd.f32 %v1018_v49, %v1010_v48 }
0x14ab   :  { %1482 = vtanh.f32 %v1020_v50  ;;  %1036 = vrot.lane.b32.xlu0 %v1020_v50, %s1574_s0 }
0x14ac   :  { %v368_v51 = vpop.permute.xlu0 %367 }
0x14ad   :  { %371 = vst.msk [vmem:[#allocation2] sm:$0xf0] %vm370_vm4, %v368_v51  ;;  %373 = vst.msk [vmem:[#allocation3] sm:$0xf0] %vm370_vm4, %v368_v51 }
0x14b0   :  { %v809_v54 = vpop.permute.xlu0 %808 }
0x14b1   :  { %811 = vst.msk [vmem:[#allocation2 + $0x10] sm:$0xf0] %vm370_vm4, %v809_v54  ;;  %813 = vst.msk [vmem:[#allocation3 + $0x10] sm:$0xf0] %vm370_vm4, %v809_v54 }
0x14b4   :  { %v1040_v56 = vld [vmem:[#allocation2] sm:$0xff] }
0x14b5   :  { %1402 = vmatprep.mubr.msk.f32.mxu1 %vm153_vm2, %v1040_v56 }
0x14b8   :  { %v1483_v57 = vpop.eup %1482  ;;  %v1042_v1 = vld [vmem:[#allocation2 + $0x10] sm:$0xff] }
0x14b9   :  { %1023 = vrot.lane.b32.xlu1 %v1483_v57, %s1572_s15 }
0x14bd   :  { %588 = vrot.lane.b32.xlu1 %v1793_v37, %s1573_s20 }
0x151d   :  { %v1037_v58 = vpop.permute.xlu0 %1036 }
0x151e   :  { %1039 = vst.msk [vmem:[#allocation8 - $0x4] sm:$0xf0] %vm370_vm4, %v1037_v58 }
0x152b   :  { %v1024_v59 = vpop.permute.xlu1 %1023 }
0x152c   :  { %v1026_v60 = vmul.f32 %v1481_v44, %v1024_v59 }
0x152e   :  { %1028 = vrot.lane.b32.xlu1 %v1026_v60, %s1573_s20 }
0x152f   :  { %v589_v61 = vpop.permute.xlu1 %588 }
0x1530   :  { %591 = vst.msk [vmem:[#allocation2 + $0x8] sm:$0xf0] %vm370_vm4, %v589_v61  ;;  %593 = vst.msk [vmem:[#allocation3 + $0x8] sm:$0xf0] %vm370_vm4, %v589_v61 }
0x1537   :  { %v1041_v62 = vld [vmem:[#allocation2 + $0x8] sm:$0xff] }
0x1538   :  { %1403 = vmatmul.mubr.msk.f32.vlgmr.msra.gmra.mxu1 %vm153_vm2, %v1041_v62 }
0x1539   :  { %1405 = vmatprep.mubr.msk.f32.mxu1 %vm153_vm2, %v1042_v1 }
0x15a0   :  { %v1029_v63 = vpop.permute.xlu1 %1028 }
0x15a1   :  { %1031 = vst.msk [vmem:[#allocation2 + $0x18] sm:$0xf0] %vm370_vm4, %v1029_v63  ;;  %1033 = vst.msk [vmem:[#allocation3 + $0x18] sm:$0xf0] %vm370_vm4, %v1029_v63 }
0x15a2   :  { %1034 = vst.msk [vmem:[#allocation7 - $0x4] sm:$0xf0] %vm370_vm4, %v1029_v63 }
0x15a8   :  { %v1043_v37 = vld [vmem:[#allocation2 + $0x18] sm:$0xff] }
0x15a9   :  { %1406 = vmatmul.mubr.msk.f32.gmra.mxu1 %vm153_vm2, %v1043_v37 }
0x15aa   :  { %1495 = shalt.err (!%p1492_p4)
}
0x15ab   :  { %s1576_s30 = smov 4   ;;  %s1577_s14 = smov [#allocation8]  }
0x15ac   :  { %1168 = dma.vmem_to_hbm [thread:$0]  %s1163_s3, 512, %s1903_s8, [#allocation4], %s1573_s20, %s1573_s20, %s1576_s30  }
0x15ad   :  { %s1197_s1 = sshll.u32 %s1577_s14, 4  ;;  %s1198_s1 = int_to_ptr.vmem [resolvable:$true] %s1197_s1 }
0x15ae   :  { %s1504_s4 = scalar_lea.vmem %s1198_s1, 64  ;;  %p1509_p6 = scmp.lt.s32.totalorder %s1198_s1, %s1198_s1 }
0x15af   :  { %p1505_p5 = scmp.ne.s32.totalorder %s1198_s1, %s1504_s4  ;;  %p1510_p7 = scmp.lt.s32.totalorder %s1504_s4, %s1504_s4 }
0x15b1   :  { %p1511_p8 = por %p1510_p7, %p1509_p6 }
0x15b3   :  { %p1512_p9 = pnand %p1511_p8, %p1505_p5 }
0x15b5   :  { %1515 = shalt.err (!%p1512_p9)
}
0x15b6   :  { %1200 = dma.vmem_to_hbm [thread:$0]  %s1198_s1, 64, %s1906_s11, [#allocation9]   ;;  %v1237_v0 = vld [vmem:[%s1902_s7] ss:$0 sm:$0xff]  ;;  %vm1152_vm5 = vcmask 64512  }
0x15b7   :  { %s1578_s8 = smov [#allocation5]   ;;  %s1579_s2 = smov [#allocation7]  }
0x15b8   :  { %s1174_s18 = sshll.u32 %s1578_s8, 4  ;;  %s1187_s19 = sshll.u32 %s1579_s2, 4  ;;  %s1175_s18 = int_to_ptr.vmem [resolvable:$true] %s1174_s18  ;;  %s1188_s19 = int_to_ptr.vmem [resolvable:$true] %s1187_s19 }
0x15b9   :  { %s1524_s7 = scalar_lea.vmem %s1175_s18, 512  ;;  %p1529_p11 = scmp.lt.s32.totalorder %s1175_s18, %s1175_s18 }
0x15ba   :  { %p1525_p10 = scmp.ne.s32.totalorder %s1175_s18, %s1524_s7  ;;  %p1530_p12 = scmp.lt.s32.totalorder %s1524_s7, %s1524_s7 }
0x15bc   :  { %p1531_p13 = por %p1530_p12, %p1529_p11 }
0x15be   :  { %p1532_p0 = pnand %p1531_p13, %p1525_p10 }
0x15f8   :  { %v1404_v5 = vpop.f32.mrf.mxu1 }
0x15f9   :  { %v1139_v2 = vadd.f32 %v1404_v5, %v1237_v0 }
0x15fa   :  { %v1133_v4 = vpop.f32.mrf.mxu1 }
0x15fb   :  { %1154 = vst.msk [vmem:[#allocation5 + $0x8] sm:$0xff] %vm1152_vm5, %v1139_v2  ;;  %v1134_v7 = vadd.f32 %v1237_v0, %v1133_v4 }
0x15fd   :  { %1153 = vst.msk [vmem:[#allocation5] sm:$0xff] %vm1152_vm5, %v1134_v7 }
0x1669   :  { %v1407_v3 = vpop.f32.mrf.mxu1 }
0x166a   :  { %v1149_v8 = vadd.f32 %v1407_v3, %v1237_v0 }
0x166b   :  { %v1143_v6 = vpop.f32.mrf.mxu1 }
0x166c   :  { %1156 = vst.msk [vmem:[#allocation5 + $0x18] sm:$0xff] %vm1152_vm5, %v1149_v8  ;;  %v1144_v9 = vadd.f32 %v1237_v0, %v1143_v6 }
0x166e   :  { %1155 = vst.msk [vmem:[#allocation5 + $0x10] sm:$0xff] %vm1152_vm5, %v1144_v9 }
0x166f   :  { %1535 = shalt.err (!%p1532_p0)
}
0x1670   :  { %s1580_s11 = smov 128   ;;  %s1581_s20 = smov 8  }
0x1671   :  { %1180 = dma.vmem_to_hbm [thread:$0]  %s1175_s18, 512, %s1904_s9, [#allocation6], %s1580_s11, %s1580_s11, %s1581_s20  }
0x1672   :  { %s1544_s22 = scalar_lea.vmem %s1188_s19, 64  ;;  %p1549_p2 = scmp.lt.s32.totalorder %s1188_s19, %s1188_s19 }
0x1673   :  { %p1545_p1 = scmp.ne.s32.totalorder %s1188_s19, %s1544_s22  ;;  %p1550_p3 = scmp.lt.s32.totalorder %s1544_s22, %s1544_s22 }
0x1675   :  { %p1551_p4 = por %p1550_p3, %p1549_p2 }
0x1677   :  { %p1552_p5 = pnand %p1551_p4, %p1545_p1 }
0x1679   :  { %1555 = shalt.err (!%p1552_p5)
}
0x167a   :  { %1190 = dma.vmem_to_hbm [thread:$0]  %s1188_s19, 64, %s1905_s10, [#allocation6]  }
0x167b   :  { %1564 = dma.done.wait [#allocation4], 512  }
0x167c   :  { %1565 = vsyncadd [#allocation4], 4294966784 }
0x167d   :  { %1566 = dma.done.wait [#allocation6], 576  }
0x167e   :  { %1567 = vsyncadd [#allocation6], 4294966720 }
0x167f   :  { %1568 = dma.done.wait [#allocation9], 64  }
0x1680   :  { %1569 = vsyncadd [#allocation9], 4294967232 }
0x1681   :  { %1213 = vsyncpa [#allocation4], 1 }
0x1682   :  { %1214 = vsyncpa [#allocation6], 1 }
0x1683   :  { %1215 = vsyncpa [#allocation9], 1 }

</bundles_post_ra>
